<compile_context>
chip_gen: v7x
topology: tpu7x:2x2x1
jax: 0.10.0
libtpu: 0.0.40
codegen_flags: <defaults>
</compile_context>

<pallas_src>
import jax
import jax.numpy as jnp
from jax import lax
from jax.experimental import pallas as pl
from jax.experimental.pallas import tpu as pltpu


def _round_up(x, m):
    return ((x + m - 1) // m) * m


def _cdiv(a, b):
    return (a + b - 1) // b


def _unrolled_int_pow(x, n: int):
    """x**n for static int n >= 1, unrolled at trace time (VPU muls only)."""
    result = None
    base = x
    while n > 0:
        if n & 1:
            result = base if result is None else result * base
        n >>= 1
        if n > 0:
            base = base * base
    return result


def make_focal_loss(batch, num_classes, *, alpha=1.0, gamma=5,
                    in_dtype=jnp.float32, max_block_bytes=4 * 1024 * 1024):
    """Returns focal_loss(inputs, targets) -> scalar mean focal loss."""
    itemsize = jnp.dtype(in_dtype).itemsize
    c_lanes = _round_up(num_classes, 128)        # VMEM lane footprint of a row

    # ---- static tiling decisions -------------------------------------------
    batch8 = _round_up(batch, 8)
    # Row-chunk for elementwise temporaries (~<= 512 KiB of f32 per temp).
    chunk_rows = max(8, min(512, (131072 // c_lanes) // 8 * 8, batch8))
    # Largest DMA tile (multiple of chunk_rows) within the per-block budget.
    max_block_elems = max_block_bytes // itemsize
    rows_cap = max(chunk_rows,
                   (max_block_elems // c_lanes) // chunk_rows * chunk_rows)
    tile_b = min(rows_cap, _round_up(batch, chunk_rows))
    n_chunks = tile_b // chunk_rows

    n_tiles = _cdiv(batch, tile_b)
    # Always split tiles across a leading "parallel" axis when possible
    # (both TensorCores on v7x; no-op on v5e/v6e).
    if n_tiles >= 2:
        n_par, tiles_per_core = 2, _cdiv(n_tiles, 2)
    else:
        n_par, tiles_per_core = 1, n_tiles

    has_overflow = n_par * tiles_per_core > n_tiles
    needs_row_mask = (batch % tile_b) != 0

    gamma_is_int = float(gamma).is_integer() and float(gamma) >= 0.0
    gamma_int = int(gamma) if gamma_is_int else None

    # alpha and the mean's 1/N fold into a single wrapper-side scalar.
    scale = float(alpha) / float(batch * num_classes)

    # ---- kernel -------------------------------------------------------------
    def kernel(x_ref, t_ref, out_ref, acc_ref):
        p = pl.program_id(0)
        j = pl.program_id(1)
        tile_idx = p * tiles_per_core + j
        block_row0 = tile_idx * tile_b

        @pl.when(j == 0)
        def _():
            acc_ref[...] = jnp.zeros_like(acc_ref)

        def do_chunk(r0, use_mask):
            x = x_ref[pl.ds(r0, chunk_rows), :].astype(jnp.float32)
            t = t_ref[pl.ds(r0, chunk_rows), :].astype(jnp.float32)
            # Numerically stable BCE-with-logits (matches PyTorch):
            #   max(x, 0) - x*t + log(1 + exp(-|x|))
            bce = jnp.maximum(x, 0.0) - x * t + jnp.log1p(jnp.exp(-jnp.abs(x)))
            pt = jnp.exp(-bce)
            one_minus_pt = 1.0 - pt
            if gamma_is_int:
                if gamma_int == 0:
                    w = jnp.ones_like(bce)
                else:
                    w = _unrolled_int_pow(one_minus_pt, gamma_int)
            else:
                # Non-integer gamma: clamp base at 0 (PyTorch would NaN when
                # rounding pushes pt above 1).
                w = jnp.power(jnp.maximum(one_minus_pt, 0.0), jnp.float32(gamma))
            focal = w * bce                       # alpha folded into wrapper
            if use_mask:
                rows = lax.broadcasted_iota(jnp.int32, (chunk_rows, 1), 0)
                rows = rows + (block_row0 + r0)
                # where-select (not multiply): garbage rows of the ragged edge
                # block are dropped before accumulation.
                focal = jnp.where(rows < batch, focal, 0.0)
            # Fold into a vreg-shaped (8, C) partial with pure VPU adds.
            acc_ref[...] += focal.reshape(chunk_rows // 8, 8,
                                          num_classes).sum(axis=0)

        def run_chunks(use_mask):
            if n_chunks == 1:
                do_chunk(0, use_mask)
            else:
                @pl.loop(0, n_chunks)
                def _(c):
                    do_chunk(pl.multiple_of(c * chunk_rows, chunk_rows),
                             use_mask)

        if needs_row_mask:
            @pl.when(tile_idx == n_tiles - 1)
            def _():
                run_chunks(True)          # the one ragged tile pays the mask
            if n_tiles > 1:
                @pl.when(tile_idx < n_tiles - 1)
                def _():
                    run_chunks(False)     # fast path: no mask at all
        elif has_overflow:
            @pl.when(tile_idx < n_tiles)
            def _():
                run_chunks(False)
        else:
            run_chunks(False)

        @pl.when(j == tiles_per_core - 1)
        def _():
            out_ref[0, 0] = jnp.sum(acc_ref[...])

    if has_overflow:
        def in_index_map(p, j):
            # Clamp the overflow tile's DMA in-range; its compute is skipped.
            return (jnp.minimum(p * tiles_per_core + j, n_tiles - 1), 0)
    else:
        def in_index_map(p, j):
            return (p * tiles_per_core + j, 0)

    grid_spec = pltpu.PrefetchScalarGridSpec(
        num_scalar_prefetch=0,
        grid=(n_par, tiles_per_core),
        in_specs=[
            pl.BlockSpec((tile_b, num_classes), in_index_map),
            pl.BlockSpec((tile_b, num_classes), in_index_map),
        ],
        out_specs=pl.BlockSpec(
            (1, 1), lambda p, j: (p, 0), memory_space=pltpu.MemorySpace.SMEM
        ),
        scratch_shapes=[pltpu.VMEM((8, num_classes), jnp.float32)],
    )

    # Explicit VMEM budget: 2 inputs x 2 pipeline buffers x block + chunk
    # temporaries + accumulator, clamped to <= 48 MiB (safe on v7x's 64 MiB).
    block_vmem = tile_b * c_lanes * itemsize
    temps_vmem = 10 * chunk_rows * c_lanes * 4
    vmem_limit = 2 * 2 * block_vmem + temps_vmem + 8 * c_lanes * 4 + (2 << 20)
    vmem_limit = int(min(max(vmem_limit, 16 << 20), 48 << 20))

    fn = pl.pallas_call(
        kernel,
        out_shape=jax.ShapeDtypeStruct((n_par, 1), jnp.float32),
        grid_spec=grid_spec,
        compiler_params=pltpu.CompilerParams(
            dimension_semantics=("parallel", "arbitrary"),
            vmem_limit_bytes=vmem_limit,
        ),
    )

    def focal_loss(inputs, targets):
        # TODO(synk): reduce=False (per-element loss map) not implemented;
        # this kernel returns the reduce=True mean only.
        partials = fn(inputs, targets)            # (n_par, 1) per-core sums
        return jnp.sum(partials) * jnp.float32(scale)

    return focal_loss


def focal_loss_ref(inputs, targets, alpha=1.0, gamma=5):
    x = inputs.astype(jnp.float32)
    t = targets.astype(jnp.float32)
    bce = jnp.maximum(x, 0.0) - x * t + jnp.log1p(jnp.exp(-jnp.abs(x)))
    pt = jnp.exp(-bce)
    return jnp.mean(alpha * (1.0 - pt) ** gamma * bce)


if __name__ == "__main__":
    batch, num_classes = 16, 128  # small multilabel-classification shape
    key = jax.random.PRNGKey(0)
    k_x, k_t = jax.random.split(key)
    inputs = jax.random.normal(k_x, (batch, num_classes), dtype=jnp.float32)
    targets = jax.random.bernoulli(k_t, 0.3, (batch, num_classes)).astype(jnp.float32)

    loss_fn = make_focal_loss(batch, num_classes, alpha=1.0, gamma=5)
    loss = jax.block_until_ready(loss_fn(inputs, targets))

    ref = jax.block_until_ready(focal_loss_ref(inputs, targets, alpha=1.0, gamma=5))
    assert jnp.allclose(loss, ref, rtol=1e-5, atol=1e-6), (loss, ref)

    print("KERNEL_OK")
</pallas_src>

<mosaic_0001>
module attributes {stable_mosaic.version = 11 : i64} {
  func.func @kernel(%arg0: i32, %arg1: i32, %arg2: memref<16x128xf32, #tpu.memory_space<vmem>>, %arg3: memref<16x128xf32, #tpu.memory_space<vmem>>, %arg4: memref<1x1xf32, #tpu.memory_space<smem>>, %arg5: memref<8x128xf32, #tpu.memory_space<vmem>>) attributes {dimension_semantics = [#tpu.dimension_semantics<parallel>, #tpu.dimension_semantics<arbitrary>], iteration_bounds = array<i64: 1, 1>, scalar_prefetch = 0 : i64, scratch_operands = 1 : i64, tpu.core_type = #tpu.core_type<tc>, window_params = [{transform_indices = @transform_0, window_bounds = array<i64: 16, 128>}, {transform_indices = @transform_1, window_bounds = array<i64: 16, 128>}, {transform_indices = @transform_2, window_bounds = array<i64: 1, 1>}]} {
    %c0_i32 = arith.constant 0 : i32
    %0 = arith.cmpi eq, %arg1, %c0_i32 : i32
    %1 = arith.extui %0 : i1 to i32
    %c0_i32_0 = arith.constant 0 : i32
    %2 = arith.cmpi ne, %1, %c0_i32_0 : i32
    scf.if %2 {
      %cst_14 = arith.constant 0.000000e+00 : f32
      %32 = vector.broadcast %cst_14 : f32 to vector<8x128xf32>
      %c0_15 = arith.constant 0 : index
      %c0_16 = arith.constant 0 : index
      %33 = vector.load %arg5[%c0_15, %c0_16] : memref<8x128xf32, #tpu.memory_space<vmem>>, vector<8x128xf32>
      tpu.vector_store %arg5[%c0_15, %c0_16], %32 {strides = array<i32>} : memref<8x128xf32, #tpu.memory_space<vmem>>, vector<8x128xf32>,
    } else {
    }
    %c0 = arith.constant 0 : index
    %c0_1 = arith.constant 0 : index
    %3 = vector.load %arg2[%c0, %c0_1] : memref<16x128xf32, #tpu.memory_space<vmem>>, vector<16x128xf32>
    %c0_2 = arith.constant 0 : index
    %c0_3 = arith.constant 0 : index
    %4 = vector.load %arg3[%c0_2, %c0_3] : memref<16x128xf32, #tpu.memory_space<vmem>>, vector<16x128xf32>
    %cst = arith.constant 0.000000e+00 : f32
    %5 = vector.broadcast %cst : f32 to vector<16x128xf32>
    %6 = arith.maximumf %3, %5 : vector<16x128xf32>
    %7 = arith.mulf %3, %4 : vector<16x128xf32>
    %8 = arith.subf %6, %7 : vector<16x128xf32>
    %9 = math.absf %3 : vector<16x128xf32>
    %cst_4 = arith.constant 0.000000e+00 : f32
    %10 = vector.broadcast %cst_4 : f32 to vector<16x128xf32>
    %11 = arith.subf %10, %9 : vector<16x128xf32>
    %12 = math.exp %11 : vector<16x128xf32>
    %13 = math.log1p %12 : vector<16x128xf32>
    %14 = arith.addf %8, %13 : vector<16x128xf32>
    %cst_5 = arith.constant 0.000000e+00 : f32
    %15 = vector.broadcast %cst_5 : f32 to vector<16x128xf32>
    %16 = arith.subf %15, %14 : vector<16x128xf32>
    %17 = math.exp %16 : vector<16x128xf32>
    %cst_6 = arith.constant 1.000000e+00 : f32
    %18 = vector.broadcast %cst_6 : f32 to vector<16x128xf32>
    %19 = arith.subf %18, %17 : vector<16x128xf32>
    %20 = arith.mulf %19, %19 : vector<16x128xf32>
    %21 = arith.mulf %20, %20 : vector<16x128xf32>
    %22 = arith.mulf %19, %21 : vector<16x128xf32>
    %23 = arith.mulf %22, %14 : vector<16x128xf32>
    %c0_7 = arith.constant 0 : index
    %c0_8 = arith.constant 0 : index
    %24 = vector.load %arg5[%c0_7, %c0_8] : memref<8x128xf32, #tpu.memory_space<vmem>>, vector<8x128xf32>
    %25 = vector.shape_cast %23 : vector<16x128xf32> to vector<2x8x128xf32>
    %cst_9 = arith.constant dense<0.000000e+00> : vector<8x128xf32>
    %26 = vector.multi_reduction <add>, %25, %cst_9 [0] : vector<2x8x128xf32> to vector<8x128xf32>
    %27 = arith.addf %24, %26 : vector<8x128xf32>
    %c0_10 = arith.constant 0 : index
    %c0_11 = arith.constant 0 : index
    %28 = vector.load %arg5[%c0_10, %c0_11] : memref<8x128xf32, #tpu.memory_space<vmem>>, vector<8x128xf32>
    tpu.vector_store %arg5[%c0_10, %c0_11], %27 {strides = array<i32>} : memref<8x128xf32, #tpu.memory_space<vmem>>, vector<8x128xf32>,
    %c0_i32_12 = arith.constant 0 : i32
    %29 = arith.cmpi eq, %arg1, %c0_i32_12 : i32
    %30 = arith.extui %29 : i1 to i32
    %c0_i32_13 = arith.constant 0 : i32
    %31 = arith.cmpi ne, %30, %c0_i32_13 : i32
    scf.if %31 {
      %c0_14 = arith.constant 0 : index
      %c0_15 = arith.constant 0 : index
      %32 = vector.load %arg5[%c0_14, %c0_15] : memref<8x128xf32, #tpu.memory_space<vmem>>, vector<8x128xf32>
      %33 = vector.shape_cast %32 : vector<8x128xf32> to vector<1x8x128xf32>
      %cst_16 = arith.constant dense<0.000000e+00> : vector<1xf32>
      %34 = vector.multi_reduction <add>, %33, %cst_16 [1, 2] : vector<1x8x128xf32> to vector<1xf32>
      %35 = vector.shape_cast %34 : vector<1xf32> to vector<1x1x1xf32>
      %36 = vector.extract %35[0, 0, 0] : f32 from vector<1x1x1xf32>
      %c0_17 = arith.constant 0 : index
      %c0_18 = arith.constant 0 : index
      %37 = memref.load %arg4[%c0_17, %c0_18] : memref<1x1xf32, #tpu.memory_space<smem>>
      memref.store %36, %arg4[%c0_17, %c0_18] : memref<1x1xf32, #tpu.memory_space<smem>>
    } else {
    }
    return
  }
  func.func @transform_0(%arg0: i32, %arg1: i32) -> (i32, i32) {
    %c1_i32 = arith.constant 1 : i32
    %0 = arith.muli %arg0, %c1_i32 : i32
    %1 = arith.addi %0, %arg1 : i32
    %c0_i32 = arith.constant 0 : i32
    %c0_i32_0 = arith.constant 0 : i32
    return %1, %c0_i32 : i32, i32
  }
  func.func @transform_1(%arg0: i32, %arg1: i32) -> (i32, i32) {
    %c1_i32 = arith.constant 1 : i32
    %0 = arith.muli %arg0, %c1_i32 : i32
    %1 = arith.addi %0, %arg1 : i32
    %c0_i32 = arith.constant 0 : i32
    %c0_i32_0 = arith.constant 0 : i32
    return %1, %c0_i32 : i32, i32
  }
  func.func @transform_2(%arg0: i32, %arg1: i32) -> (i32, i32) {
    %c0_i32 = arith.constant 0 : i32
    %c0_i32_0 = arith.constant 0 : i32
    return %arg0, %c0_i32 : i32, i32
  }
}

</mosaic_0001>

<bundles_post_ra>
// kernel: tpu_custom_call.1
= control target key start
LH: loop header
LB: loop body
LE: loop exit
PB: predicated region body
PF: predicated region fallthrough
CT: control target
= control target key end

     0   :  { %7 = vsyncpa [#allocation4], 0  ;;  %s280_s0 = inlined_call_operand.hbm [shape: f32[16,128], index: 0, kind: input, shape index: {}]   ;;  %s281_s1 = inlined_call_operand.hbm [shape: f32[16,128], index: 1, kind: input, shape index: {}]   ;;  %s282_s2 = inlined_call_operand.hbm [shape: f32[1,1], index: 2, kind: output, shape index: {}]  }
   0x1   :  { %8 = vsyncpa [#allocation7], 0 }
   0x2   :  { %9 = vsyncpa [#allocation5], 0  ;;  %s224_s9 = smov [#allocation3]   ;;  %s164_s13 = scalar_lea.hbm %s280_s0, 256 }
   0x3   :  { %s19_s10 = sshll.u32 %s224_s9, 4  ;;  %p165_p0 = scmp.ne.s32.totalorder %s280_s0, %s164_s13  ;;  %s20_s10 = int_to_ptr.vmem [resolvable:$true] %s19_s10 }
   0x4   :  { %p168_p1 = scmp.lt.u32.totalorder %s164_s13, %s280_s0 }
   0x6   :  { %p170_p2 = pnand %p168_p1, %p165_p0 }
   0x8   :  { %173 = shalt.err (!%p170_p2)
}
   0x9   :  { %s174_s18 = scalar_lea.vmem %s20_s10, 256  ;;  %p179_p4 = scmp.lt.s32.totalorder %s20_s10, %s20_s10 }
   0xa   :  { %p175_p3 = scmp.ne.s32.totalorder %s20_s10, %s174_s18  ;;  %p180_p5 = scmp.lt.s32.totalorder %s174_s18, %s174_s18 }
   0xc   :  { %p181_p6 = por %p180_p5, %p179_p4 }
   0xe   :  { %p182_p7 = pnand %p181_p6, %p175_p3 }
  0x10   :  { %185 = shalt.err (!%p182_p7)
}
  0x11   :  { %s225_s19 = smov 128   ;;  %s226_s20 = smov 8  }
  0x12   :  { %25 = dma.hbm_to_vmem [thread:$0]  %s280_s0, 256, %s20_s10, [#allocation4], %s225_s19, %s225_s19, %s226_s20  }
  0x13   :  { %s227_s23 = smov [#allocation6]   ;;  %s186_s27 = scalar_lea.hbm %s281_s1, 256 }
  0x14   :  { %s35_s24 = sshll.u32 %s227_s23, 4  ;;  %p187_p8 = scmp.ne.s32.totalorder %s281_s1, %s186_s27  ;;  %s36_s24 = int_to_ptr.vmem [resolvable:$true] %s35_s24 }
  0x15   :  { %p190_p9 = scmp.lt.u32.totalorder %s186_s27, %s281_s1 }
  0x17   :  { %p192_p10 = pnand %p190_p9, %p187_p8 }
  0x19   :  { %195 = shalt.err (!%p192_p10)
}
  0x1a   :  { %s196_s4 = scalar_lea.vmem %s36_s24, 256  ;;  %p201_p12 = scmp.lt.s32.totalorder %s36_s24, %s36_s24 }
  0x1b   :  { %p197_p11 = scmp.ne.s32.totalorder %s36_s24, %s196_s4  ;;  %p202_p13 = scmp.lt.s32.totalorder %s196_s4, %s196_s4 }
  0x1d   :  { %p203_p0 = por %p202_p13, %p201_p12 }
  0x1f   :  { %p204_p1 = pnand %p203_p0, %p197_p11 }
  0x21   :  { %207 = shalt.err (!%p204_p1)
}
  0x22   :  { %41 = dma.hbm_to_vmem [thread:$0]  %s281_s1, 256, %s36_s24, [#allocation7], %s225_s19, %s225_s19, %s226_s20  }
  0x23   :  { %218 = dma.done.wait [#allocation4], 256  }
  0x24   :  { %219 = vsyncadd [#allocation4], 4294967040 }
  0x25   :  { %220 = dma.done.wait [#allocation7], 256  }
  0x26   :  { %221 = vsyncadd [#allocation7], 4294967040  ;;  %v57_v0 = vld [vmem:[#allocation3] sm:$0xff]  ;;  %v58_v1 = vld [vmem:[#allocation3 + $0x8] sm:$0xff]  ;;  %s208_s8 = scalar_lea.hbm %s282_s2, 16 }
  0x27   :  { %v67_v2 = vand.u32 2147483647, %v57_v0  ;;  %v68_v3 = vand.u32 2147483647, %v58_v1  ;;  %v59_v14 = vld [vmem:[#allocation6] sm:$0xff]  ;;  %v60_v15 = vld [vmem:[#allocation6 + $0x8] sm:$0xff]  ;;  %p209_p2 = scmp.ne.s32.totalorder %s282_s2, %s208_s8  ;;  %p212_p3 = scmp.lt.u32.totalorder %s208_s8, %s282_s2 }
  0x28   :  { %v61_v17 = vmax.f32 %v57_v0, 0.0  ;;  %v63_v18 = vmul.f32 %v59_v14, %v57_v0  ;;  %v62_v21 = vmax.f32 %v58_v1, 0.0  ;;  %v64_v22 = vmul.f32 %v60_v15, %v58_v1 }
  0x29   :  { %v69_v4 = vsub.f32 0.0, %v67_v2  ;;  %v70_v5 = vsub.f32 0.0, %v68_v3  ;;  %p214_p4 = pnand %p212_p3, %p209_p2 }
  0x2a   :  { %v65_v26 = vsub.f32 %v61_v17, %v63_v18  ;;  %v66_v29 = vsub.f32 %v62_v21, %v64_v22 }
  0x2b   :  { %v71_v6 = vmul.f32 1.442695, %v69_v4  ;;  %v73_v7 = vmul.f32 1.442695, %v70_v5 }
  0x2d   :  { %152 = vpow2.f32 %v71_v6 }
  0x2e   :  { %154 = vpow2.f32 %v73_v7 }
  0x37   :  { %v153_v8 = vpop.eup %152 }
  0x38   :  { %v155_v9 = vpop.eup %154  ;;  %v75_v10 = vadd.f32 1.0, %v153_v8  ;;  %v78_v12 = vmul.f32 -0.5, %v153_v8  ;;  %v81_v19 = vand.u32 2147483647, %v153_v8 }
  0x39   :  { %v84_v11 = vadd.f32 1.0, %v155_v9  ;;  %v87_v13 = vmul.f32 -0.5, %v155_v9  ;;  %v90_v23 = vand.u32 2147483647, %v155_v9 }
  0x3a   :  { %156 = vlog2.f32 %v75_v10  ;;  %v79_v16 = vadd.f32 1.0, %v78_v12  ;;  %vm82_vm0 = vcmp.lt.f32.partialorder %v81_v19, 0.0004427343 }
  0x3b   :  { %158 = vlog2.f32 %v84_v11  ;;  %v88_v20 = vadd.f32 1.0, %v87_v13  ;;  %vm91_vm1 = vcmp.lt.f32.partialorder %v90_v23, 0.0004427343 }
  0x3c   :  { %v80_v24 = vmul.f32 %v153_v8, %v79_v16 }
  0x3d   :  { %v89_v27 = vmul.f32 %v155_v9, %v88_v20 }
  0x44   :  { %v157_v25 = vpop.eup %156 }
  0x45   :  { %v159_v28 = vpop.eup %158  ;;  %v77_v30 = vmul.f32 0.6931472, %v157_v25 }
  0x46   :  { %v86_v31 = vmul.f32 0.6931472, %v159_v28 }
  0x47   :  { %v83_v32 = vsel %vm82_vm0, %v80_v24, %v77_v30 }
  0x48   :  { %v92_v33 = vsel %vm91_vm1, %v89_v27, %v86_v31  ;;  %v93_v34 = vadd.f32 %v83_v32, %v65_v26 }
  0x49   :  { %v94_v35 = vadd.f32 %v92_v33, %v66_v29 }
  0x4a   :  { %v95_v36 = vsub.f32 0.0, %v93_v34 }
  0x4b   :  { %v96_v37 = vsub.f32 0.0, %v94_v35 }
  0x4c   :  { %v97_v38 = vmul.f32 1.442695, %v95_v36 }
  0x4d   :  { %v99_v39 = vmul.f32 1.442695, %v96_v37 }
  0x4e   :  { %160 = vpow2.f32 %v97_v38 }
  0x4f   :  { %162 = vpow2.f32 %v99_v39 }
  0x58   :  { %v161_v40 = vpop.eup %160 }
  0x59   :  { %v163_v41 = vpop.eup %162  ;;  %v101_v42 = vsub.f32 1.0, %v161_v40 }
  0x5a   :  { %v102_v43 = vsub.f32 1.0, %v163_v41 }
  0x5b   :  { %v103_v44 = vmul.f32 %v101_v42, %v101_v42 }
  0x5c   :  { %v104_v45 = vmul.f32 %v102_v43, %v102_v43 }
  0x5d   :  { %v105_v46 = vmul.f32 %v103_v44, %v103_v44 }
  0x5e   :  { %v106_v47 = vmul.f32 %v104_v45, %v104_v45 }
  0x5f   :  { %v107_v48 = vmul.f32 %v105_v46, %v101_v42 }
  0x60   :  { %v108_v49 = vmul.f32 %v106_v47, %v102_v43 }
  0x61   :  { %v109_v50 = vmul.f32 %v107_v48, %v93_v34 }
  0x62   :  { %v110_v51 = vmul.f32 %v108_v49, %v94_v35 }
  0x64   :  { %v112_v52 = vadd.f32 %v110_v51, %v109_v50 }
  0x66   :  { %119 = vadd.xlane.f32.xlu0 %v112_v52 }
  0xf3   :  { %v120_v53 = vpop.xlane.xlu0 %119 }
  0xf4   :  { %v121_v54 = vrot.slane %v120_v53, 4 }
  0xf6   :  { %v122_v55 = vadd.f32 %v121_v54, %v120_v53 }
  0xf8   :  { %v123_v56 = vrot.slane %v122_v55, 2 }
  0xfa   :  { %v124_v57 = vadd.f32 %v123_v56, %v122_v55 }
  0xfc   :  { %v125_v58 = vrot.slane %v124_v57, 1 }
  0xfe   :  { %v126_v59 = vadd.f32 %v125_v58, %v124_v57 }
 0x100   :  { %145 = vpush %v126_v59 }
 0x131   :  { %s146_s1 = spop %145 }
 0x132   :  { %129 = sst [smem:[#allocation8]] %s146_s1 }
 0x133   :  { %217 = shalt.err (!%p214_p4)
}
 0x134   :  { %s228_s13 = smov [#allocation8]  }
 0x135   :  { %137 = dma.smem_to_hbm %s228_s13, 16, %s282_s2, [#allocation5]  }
 0x136   :  { %222 = dma.done.wait [#allocation5], 16  }
 0x137   :  { %223 = vsyncadd [#allocation5], 4294967280 }
 0x138   :  { %141 = sfence }
 0x139   :  { %142 = vsyncpa [#allocation4], 1 }
 0x13a   :  { %143 = vsyncpa [#allocation7], 1 }
 0x13b   :  { %144 = vsyncpa [#allocation5], 1 }

</bundles_post_ra>
